<compile_context>
chip_gen: v5e
topology: v5e:2x2
jax: 0.10.0
libtpu: 0.0.40
codegen_flags: <defaults>
</compile_context>

<pallas_src>
import functools

import jax
import jax.numpy as jnp
from jax.experimental import pallas as pl
from jax.experimental.pallas import tpu as pltpu


# ------------------------------- helpers --------------------------------------
def _round_up(x, m):
    return ((x + m - 1) // m) * m


def _cdiv(a, b):
    return -(-a // b)


def _choose_d_chunk(D):
    """Largest 128-multiple divisor of D up to 512 (else the full D)."""
    for c in (512, 384, 256, 128):
        if D > c and D % c == 0:
            return c
    return D


def _choose_tm(M, block_m, row_align):
    bm = _round_up(max(row_align, block_m), row_align)
    # Shrink the tile so the "parallel" M axis has enough tiles for 2 TCs (v7x).
    while bm > 128 and _cdiv(M, bm) < 8:
        bm = _round_up(bm // 2, row_align)
    bm = max(row_align, min(bm, _round_up(M, row_align)))
    # Prefer a tile size that divides M exactly -> no pad / slice HBM round-trip.
    for cand in range(bm, row_align - 1, -row_align):
        if M % cand == 0:
            return cand
    return bm  # ragged tail -> pad in the wrapper


def _vmem_limit_bytes(tm, H, D, d_chunk, op_bytes, out_bytes):
    need = (
        (H * D + D * H) * op_bytes      # W1 + W2, resident, single-buffered
        + (D + H) * 4                   # biases (f32)
        + 2 * tm * H * op_bytes         # x tiles (double-buffered)
        + 2 * tm * H * out_bytes        # out tiles (double-buffered)
        + tm * d_chunk * 4              # live GELU chunk (f32)
        + tm * H * 4                    # f32 accumulator
    )
    try:
        cap = int(pltpu.get_tpu_info().vmem_capacity_bytes)
    except Exception:
        cap = 64 * 1024 * 1024          # conservative: v7x per-TC VMEM
    # Headroom for compiler scratch; never below 32 MiB, never above ~80% of VMEM.
    return int(min(0.8 * cap, max(32 * 1024 * 1024, 2 * need)))


def _resident_spec(shape):
    """BlockSpec constant in the grid -> single-buffered resident VMEM copy."""
    idx = lambda i: (0,) * len(shape)
    try:
        return pl.BlockSpec(shape, idx, pipeline_mode=pl.Buffered(1))
    except TypeError:   # jax version without pipeline_mode on BlockSpec
        return pl.BlockSpec(shape, idx)


# ----------------------------- Pallas kernel ----------------------------------
def _gelu_tanh(h):
    c = 0.7978845608028654  # sqrt(2/pi)
    return 0.5 * h * (1.0 + jnp.tanh(c * (h + 0.044715 * h * h * h)))


def _mlp_kernel(x_ref, w1_ref, b1_ref, w2_ref, b2_ref, o_ref, *, d_chunk, n_chunks):
    # x_ref : (TM, H)   activation tile (bf16 by default)
    # w1_ref: (H, D)    fc1 weight (in, out), resident across the M grid axis
    # b1_ref: (1, D)    fc1 bias (f32)
    # w2_ref: (D, H)    fc2 weight (in, out), resident
    # b2_ref: (1, H)    fc2 bias (f32)
    # o_ref : (TM, H)
    x = x_ref[...]
    acc = jnp.zeros(o_ref.shape, jnp.float32)
    # Static unrolled chunk loop over D: the GELU (VPU/EUP) of chunk c co-issues
    # with the MXU matmuls of the neighboring chunks; the f32 intermediate is only
    # (TM, d_chunk) live at a time.
    for c in range(n_chunks):
        lo = c * d_chunk
        w1c = w1_ref[:, lo:lo + d_chunk]
        b1c = b1_ref[:, lo:lo + d_chunk]
        w2c = w2_ref[lo:lo + d_chunk, :]
        h = jnp.dot(x, w1c, preferred_element_type=jnp.float32) + b1c   # f32 epilogue
        h = _gelu_tanh(h)                                               # tanh -> EUP slot
        acc = acc + jnp.dot(h.astype(w2c.dtype), w2c,
                            preferred_element_type=jnp.float32)
    o_ref[...] = (acc + b2_ref[...]).astype(o_ref.dtype)


# -------------------------------- Wrapper --------------------------------------
@functools.partial(jax.jit, static_argnames=("block_m", "compute_dtype"))
def mlp_pallas(x, w1, b1, w2, b2, *, block_m=256, compute_dtype=jnp.bfloat16):
    """x: (B, S, H); w1: (H, D); b1: (D,); w2: (D, H); b2: (H,) -> (B, S, H)."""
    B, S, H = x.shape
    D = w1.shape[1]
    out_dtype = x.dtype

    op_dtype = jnp.dtype(compute_dtype) if compute_dtype is not None else jnp.dtype(x.dtype)
    row_align = 16 if op_dtype.itemsize < 4 else 8   # bf16 packs 16 rows per sublane group

    # Flatten (B, S) -> M; choose an M-tile that (ideally) divides M exactly.
    M = B * S
    x2 = x.reshape(M, H)
    tm = _choose_tm(M, block_m, row_align)
    m_pad = _round_up(M, tm)
    if m_pad != M:
        x2 = jnp.pad(x2, ((0, m_pad - M), (0, 0)))

    x2 = x2.astype(op_dtype)
    w1c = w1.astype(op_dtype)
    w2c = w2.astype(op_dtype)
    b1_2d = b1.reshape(1, D).astype(jnp.float32)
    b2_2d = b2.reshape(1, H).astype(jnp.float32)

    d_chunk = _choose_d_chunk(D)
    n_chunks = D // d_chunk
    kernel = functools.partial(_mlp_kernel, d_chunk=d_chunk, n_chunks=n_chunks)

    out_bytes = jnp.dtype(out_dtype).itemsize
    cost = pl.CostEstimate(
        flops=4 * m_pad * H * D,                       # two matmuls
        transcendentals=m_pad * D,                     # one tanh per intermediate element
        bytes_accessed=(m_pad * H * (op_dtype.itemsize + out_bytes)
                        + 2 * H * D * op_dtype.itemsize + (D + H) * 4),
    )

    grid = (m_pad // tm,)
    out = pl.pallas_call(
        kernel,
        out_shape=jax.ShapeDtypeStruct((m_pad, H), out_dtype),
        grid_spec=pltpu.PrefetchScalarGridSpec(
            num_scalar_prefetch=0,
            grid=grid,
            in_specs=[
                pl.BlockSpec((tm, H), lambda i: (i, 0)),   # activations: tiled over M
                _resident_spec((H, D)),                    # W1: resident, single-buffered
                _resident_spec((1, D)),                    # b1
                _resident_spec((D, H)),                    # W2
                _resident_spec((1, H)),                    # b2
            ],
            out_specs=pl.BlockSpec((tm, H), lambda i: (i, 0)),
        ),
        compiler_params=pltpu.CompilerParams(
            dimension_semantics=("parallel",),             # megacore / 2-TC sharding over M
            vmem_limit_bytes=_vmem_limit_bytes(tm, H, D, d_chunk,
                                               op_dtype.itemsize, out_bytes),
        ),
        cost_estimate=cost,
    )(x2, w1c, b1_2d, w2c, b2_2d)

    if m_pad != M:
        out = out[:M]
    return out.reshape(B, S, H)


# --------------------------- Module-like wrapper --------------------------------
class MLPPallas:
    """Mirrors PyTorch MLP: Linear(H->D) -> GELU -> Dropout -> Linear(D->H) -> Dropout."""

    def __init__(self, hidden_size, mlp_dim, dropout_rate, key):
        self.hidden_size = hidden_size
        self.mlp_dim = mlp_dim
        self.dropout_rate = dropout_rate  # identity at inference
        k1, k2, k3, k4 = jax.random.split(key, 4)
        bound1 = 1.0 / jnp.sqrt(hidden_size)
        bound2 = 1.0 / jnp.sqrt(mlp_dim)
        # Weights stored as (in, out) = transpose of the PyTorch (out, in) layout.
        self.w1 = jax.random.uniform(k1, (hidden_size, mlp_dim),
                                     minval=-bound1, maxval=bound1, dtype=jnp.float32)
        self.b1 = jax.random.uniform(k2, (mlp_dim,),
                                     minval=-bound1, maxval=bound1, dtype=jnp.float32)
        self.w2 = jax.random.uniform(k3, (mlp_dim, hidden_size),
                                     minval=-bound2, maxval=bound2, dtype=jnp.float32)
        self.b2 = jax.random.uniform(k4, (hidden_size,),
                                     minval=-bound2, maxval=bound2, dtype=jnp.float32)

    def __call__(self, x, *, compute_dtype=jnp.bfloat16, block_m=256):
        return mlp_pallas(x, self.w1, self.b1, self.w2, self.b2,
                          block_m=block_m, compute_dtype=compute_dtype)


# ----------------------------- Pure-JAX reference -------------------------------
def _mlp_ref(x, w1, b1, w2, b2, compute_dtype=None):
    out_dtype = x.dtype
    if compute_dtype is not None:
        x = x.astype(compute_dtype)
        w1 = w1.astype(compute_dtype)
        w2 = w2.astype(compute_dtype)
    h = jnp.dot(x, w1, preferred_element_type=jnp.float32) + b1
    c = 0.7978845608028654
    h = 0.5 * h * (1.0 + jnp.tanh(c * (h + 0.044715 * h * h * h)))
    out = jnp.dot(h.astype(w2.dtype), w2, preferred_element_type=jnp.float32) + b2
    return out.astype(out_dtype)


# ------------------------------------ Main --------------------------------------
if __name__ == "__main__":
    # Small config consistent with the module: hidden=32, mlp_dim=64, seq=8, batch=2.
    hidden_size, mlp_dim, dropout_rate = 32, 64, 0.1
    batch, seq = 2, 8

    key = jax.random.PRNGKey(0)
    k_x, k_params = jax.random.split(key)
    x = jax.random.normal(k_x, (batch, seq, hidden_size), dtype=jnp.float32)

    module = MLPPallas(hidden_size, mlp_dim, dropout_rate, k_params)

    # Default path: bf16 MXU operands, f32 accumulation.
    out = jax.block_until_ready(module(x))
    ref = _mlp_ref(x, module.w1, module.b1, module.w2, module.b2,
                   compute_dtype=jnp.bfloat16)
    assert out.shape == (batch, seq, hidden_size)
    assert out.dtype == x.dtype
    assert jnp.allclose(out, ref, atol=2e-2, rtol=2e-2), float(jnp.max(jnp.abs(out - ref)))

    # Full-precision path sanity check against the f32 reference.
    out_f32 = jax.block_until_ready(module(x, compute_dtype=None))
    ref_f32 = _mlp_ref(x, module.w1, module.b1, module.w2, module.b2)
    assert jnp.allclose(out_f32, ref_f32, atol=1e-4, rtol=1e-4)

    print("KERNEL_OK")
</pallas_src>

<mosaic_0001>
module attributes {stable_mosaic.version = 11 : i64} {
  func.func @_mlp_kernel(%arg0: i32, %arg1: memref<16x32xbf16, #tpu.memory_space<vmem>>, %arg2: memref<32x64xbf16, #tpu.memory_space<vmem>>, %arg3: memref<1x64xf32, #tpu.memory_space<vmem>>, %arg4: memref<64x32xbf16, #tpu.memory_space<vmem>>, %arg5: memref<1x32xf32, #tpu.memory_space<vmem>>, %arg6: memref<16x32xf32, #tpu.memory_space<vmem>>) attributes {dimension_semantics = [#tpu.dimension_semantics<parallel>], iteration_bounds = array<i64: 1>, scalar_prefetch = 0 : i64, scratch_operands = 0 : i64, tpu.core_type = #tpu.core_type<tc>, window_params = [{transform_indices = @transform_0, window_bounds = array<i64: 16, 32>}, {pipeline_mode = #tpu.pipeline_mode<synchronous>, transform_indices = @transform_1, window_bounds = array<i64: 32, 64>}, {pipeline_mode = #tpu.pipeline_mode<synchronous>, transform_indices = @transform_2, window_bounds = array<i64: 1, 64>}, {pipeline_mode = #tpu.pipeline_mode<synchronous>, transform_indices = @transform_3, window_bounds = array<i64: 64, 32>}, {pipeline_mode = #tpu.pipeline_mode<synchronous>, transform_indices = @transform_4, window_bounds = array<i64: 1, 32>}, {transform_indices = @transform_5, window_bounds = array<i64: 16, 32>}]} {
    %c0 = arith.constant 0 : index
    %c0_0 = arith.constant 0 : index
    %0 = vector.load %arg1[%c0, %c0_0] : memref<16x32xbf16, #tpu.memory_space<vmem>>, vector<16x32xbf16>
    %cst = arith.constant 0.000000e+00 : f32
    %1 = vector.broadcast %cst : f32 to vector<16x32xf32>
    %c0_1 = arith.constant 0 : index
    %c0_2 = arith.constant 0 : index
    %2 = vector.load %arg2[%c0_1, %c0_2] : memref<32x64xbf16, #tpu.memory_space<vmem>>, vector<32x64xbf16>
    %c0_3 = arith.constant 0 : index
    %c0_4 = arith.constant 0 : index
    %3 = vector.load %arg3[%c0_3, %c0_4] : memref<1x64xf32, #tpu.memory_space<vmem>>, vector<1x64xf32>
    %c0_5 = arith.constant 0 : index
    %c0_6 = arith.constant 0 : index
    %4 = vector.load %arg4[%c0_5, %c0_6] : memref<64x32xbf16, #tpu.memory_space<vmem>>, vector<64x32xbf16>
    %cst_7 = arith.constant dense<0.000000e+00> : vector<16x64xf32>
    %5 = tpu.matmul %0, %2, %cst_7 {dimension_numbers = #tpu.dot_dimension_numbers<[1], [0], [0], [1], [0, 0, 1, 1], [], []>} : vector<16x32xbf16>, vector<32x64xbf16>, vector<16x64xf32> -> vector<16x64xf32>
    %6 = vector.broadcast %3 : vector<1x64xf32> to vector<16x64xf32>
    %7 = arith.addf %5, %6 : vector<16x64xf32>
    %cst_8 = arith.constant 5.000000e-01 : f32
    %8 = vector.broadcast %cst_8 : f32 to vector<16x64xf32>
    %9 = arith.mulf %8, %7 : vector<16x64xf32>
    %cst_9 = arith.constant 4.471500e-02 : f32
    %10 = vector.broadcast %cst_9 : f32 to vector<16x64xf32>
    %11 = arith.mulf %10, %7 : vector<16x64xf32>
    %12 = arith.mulf %11, %7 : vector<16x64xf32>
    %13 = arith.mulf %12, %7 : vector<16x64xf32>
    %14 = arith.addf %7, %13 : vector<16x64xf32>
    %cst_10 = arith.constant 0.797884583 : f32
    %15 = vector.broadcast %cst_10 : f32 to vector<16x64xf32>
    %16 = arith.mulf %15, %14 : vector<16x64xf32>
    %17 = math.tanh %16 : vector<16x64xf32>
    %cst_11 = arith.constant 1.000000e+00 : f32
    %18 = vector.broadcast %cst_11 : f32 to vector<16x64xf32>
    %19 = arith.addf %18, %17 : vector<16x64xf32>
    %20 = arith.mulf %9, %19 : vector<16x64xf32>
    %21 = arith.truncf %20 : vector<16x64xf32> to vector<16x64xbf16>
    %cst_12 = arith.constant dense<0.000000e+00> : vector<16x32xf32>
    %22 = tpu.matmul %21, %4, %cst_12 {dimension_numbers = #tpu.dot_dimension_numbers<[1], [0], [0], [1], [0, 0, 1, 1], [], []>} : vector<16x64xbf16>, vector<64x32xbf16>, vector<16x32xf32> -> vector<16x32xf32>
    %23 = arith.addf %1, %22 : vector<16x32xf32>
    %c0_13 = arith.constant 0 : index
    %c0_14 = arith.constant 0 : index
    %24 = vector.load %arg5[%c0_13, %c0_14] : memref<1x32xf32, #tpu.memory_space<vmem>>, vector<1x32xf32>
    %25 = vector.broadcast %24 : vector<1x32xf32> to vector<16x32xf32>
    %26 = arith.addf %23, %25 : vector<16x32xf32>
    %c0_15 = arith.constant 0 : index
    %c0_16 = arith.constant 0 : index
    %27 = vector.load %arg6[%c0_15, %c0_16] : memref<16x32xf32, #tpu.memory_space<vmem>>, vector<16x32xf32>
    tpu.vector_store %arg6[%c0_15, %c0_16], %26 {strides = array<i32>} : memref<16x32xf32, #tpu.memory_space<vmem>>, vector<16x32xf32>,
    return
  }
  func.func @transform_0(%arg0: i32) -> (i32, i32) {
    %c0_i32 = arith.constant 0 : i32
    %c0_i32_0 = arith.constant 0 : i32
    return %arg0, %c0_i32 : i32, i32
  }
  func.func @transform_1(%arg0: i32) -> (i32, i32) {
    %c0_i32 = arith.constant 0 : i32
    %c0_i32_0 = arith.constant 0 : i32
    %c0_i32_1 = arith.constant 0 : i32
    return %c0_i32, %c0_i32_0 : i32, i32
  }
  func.func @transform_2(%arg0: i32) -> (i32, i32) {
    %c0_i32 = arith.constant 0 : i32
    %c0_i32_0 = arith.constant 0 : i32
    %c0_i32_1 = arith.constant 0 : i32
    return %c0_i32, %c0_i32_0 : i32, i32
  }
  func.func @transform_3(%arg0: i32) -> (i32, i32) {
    %c0_i32 = arith.constant 0 : i32
    %c0_i32_0 = arith.constant 0 : i32
    %c0_i32_1 = arith.constant 0 : i32
    return %c0_i32, %c0_i32_0 : i32, i32
  }
  func.func @transform_4(%arg0: i32) -> (i32, i32) {
    %c0_i32 = arith.constant 0 : i32
    %c0_i32_0 = arith.constant 0 : i32
    %c0_i32_1 = arith.constant 0 : i32
    return %c0_i32, %c0_i32_0 : i32, i32
  }
  func.func @transform_5(%arg0: i32) -> (i32, i32) {
    %c0_i32 = arith.constant 0 : i32
    %c0_i32_0 = arith.constant 0 : i32
    return %arg0, %c0_i32 : i32, i32
  }
}

</mosaic_0001>

<bundles_post_ra>
// kernel: mlp_pallas.1
= control target key start
LH: loop header
LB: loop body
LE: loop exit
PB: predicated region body
PF: predicated region fallthrough
CT: control target
= control target key end

     0   :  { %s298_s0 = inlined_call_operand.vmem [shape: bf16[16,32], index: 0, kind: input, shape index: {}]   ;;  %s299_s1 = inlined_call_operand.vmem [shape: bf16[32,64], index: 1, kind: input, shape index: {}]   ;;  %s300_s2 = inlined_call_operand.vmem [shape: f32[1,64], index: 2, kind: input, shape index: {}]   ;;  %s301_s3 = inlined_call_operand.vmem [shape: bf16[64,32], index: 3, kind: input, shape index: {}]   ;;  %s302_s4 = inlined_call_operand.vmem [shape: f32[1,32], index: 4, kind: input, shape index: {}]   ;;  %s303_s5 = inlined_call_operand.hbm [shape: f32[16,32], index: 5, kind: output, shape index: {}]  }
   0x1   :  { %v192_v0 = vld [vmem:[%s299_s1 + $0x8] sm:$0xff]  ;;  %v191_v1 = vld [vmem:[%s299_s1] sm:$0xff] }
   0x2   :  { %67 = vmatpush.bf16.msra.mxu0 %v192_v0 }
   0x3   :  { %10 = vsyncpa [#allocation3], 0  ;;  %v190_v2 = vld [vmem:[%s298_s0] sm:$0xff]  ;;  %vm57_vm0 = vcmask 261120   ;;  %v196_v3 = vld [vmem:[%s301_s3 + $0x18] sm:$0xff]  ;;  %vm122_vm1 = vcmask 523264  }
   0x4   :  { %130 = vmatpush.bf16.msra.mxu1 %v196_v3  ;;  %v195_v4 = vld [vmem:[%s301_s3 + $0x10] sm:$0xff]  ;;  %v194_v5 = vld [vmem:[%s301_s3 + $0x8] sm:$0xff]  ;;  %v193_v6 = vld [vmem:[%s301_s3] sm:$0xff]  ;;  %s232_s7 = smov [#allocation2]   ;;  %s148_s11 = sshll.u32 %s303_s5, 4  ;;  %s149_s11 = int_to_ptr.hbm [resolvable:$true] %s148_s11 }
   0x5   :  { %v200_v7 = vld [vmem:[%s300_s2] ss:$0 sm:$0xff]  ;;  %s146_s8 = sshll.u32 %s232_s7, 4  ;;  %s233_s12 = smov 128   ;;  %s147_s8 = int_to_ptr.vmem [resolvable:$true] %s146_s8 }
   0x6   :  { %68 = vmatpush.bf16.msra.mxu0 %v191_v1  ;;  %v201_v31 = vld [vmem:[%s302_s4] ss:$0 sm:$0xff]  ;;  %s234_s13 = smov 8  }
   0x8   :  { %131 = vmatpush.bf16.msra.mxu1 %v195_v4 }
   0x9   :  { %172 = vmatmul.msk.bf16.vlgmr.msra.gmra.mxu0 %vm57_vm0, %v190_v2 }
   0xc   :  { %132 = vmatpush.bf16.msra.mxu1 %v194_v5 }
  0x10   :  { %133 = vmatpush.bf16.msra.mxu1 %v193_v6 }
  0x86   :  { %v70_v8 = vpop.f32.mrf.mxu0 }
  0x87   :  { %v71_v9 = vadd.f32 %v200_v7, %v70_v8 }
  0x89   :  { %v77_v10 = vmul.f32 0.044715, %v71_v9  ;;  %v75_v25 = vmul.f32 0.5, %v71_v9 }
  0x8b   :  { %v79_v11 = vmul.f32 %v77_v10, %v71_v9 }
  0x8d   :  { %v81_v12 = vmul.f32 %v79_v11, %v71_v9 }
  0x8e   :  { %v72_v13 = vpop.f32.mrf.mxu0 }
  0x8f   :  { %v73_v14 = vadd.f32 %v200_v7, %v72_v13  ;;  %v83_v15 = vadd.f32 %v81_v12, %v71_v9 }
  0x91   :  { %v78_v16 = vmul.f32 0.044715, %v73_v14  ;;  %v85_v18 = vmul.f32 0.7978846, %v83_v15  ;;  %v76_v26 = vmul.f32 0.5, %v73_v14 }
  0x93   :  { %v80_v17 = vmul.f32 %v78_v16, %v73_v14  ;;  %202 = vtanh.f32 %v85_v18 }
  0x95   :  { %v82_v19 = vmul.f32 %v80_v17, %v73_v14 }
  0x97   :  { %v84_v20 = vadd.f32 %v82_v19, %v73_v14 }
  0x99   :  { %v86_v21 = vmul.f32 0.7978846, %v84_v20  ;;  %v203_v22 = vpop.eup %202 }
  0x9a   :  { %v89_v23 = vadd.f32 1.0, %v203_v22 }
  0x9b   :  { %204 = vtanh.f32 %v86_v21 }
  0x9c   :  { %v91_v28 = vmul.f32 %v89_v23, %v75_v25 }
  0xa1   :  { %v205_v24 = vpop.eup %204 }
  0xa2   :  { %v90_v27 = vadd.f32 1.0, %v205_v24 }
  0xa4   :  { %v92_v29 = vmul.f32 %v90_v27, %v76_v26 }
  0xa6   :  { %v93_v30 = vpack.c.bf16 %v92_v29, %v91_v28 }
  0xa8   :  { %189 = vmatmul.msk.bf16.vlgmr.msra.gmra.mxu1 %vm122_vm1, %v93_v30 }
 0x125   :  { %v135_v32 = vpop.f32.mrf.mxu1 }
 0x126   :  { %v136_v33 = vadd.f32 %v201_v31, %v135_v32 }
 0x128   :  { %140 = vst.msk [vmem:[#allocation2] sm:$0xff] %vm57_vm0, %v136_v33 }
 0x12d   :  { %v137_v34 = vpop.f32.mrf.mxu1 }
 0x12e   :  { %v138_v35 = vadd.f32 %v201_v31, %v137_v34 }
 0x130   :  { %141 = vst.msk [vmem:[#allocation2 + $0x8] sm:$0xff] %vm57_vm0, %v138_v35 }
 0x131   :  { %154 = dma.vmem_to_hbm [thread:$0]  %s147_s8, 256, %s149_s11, [#allocation3], %s233_s12, %s233_s12, %s234_s13  }
 0x132   :  { %230 = dma.done.wait [#allocation3], 256  }
 0x133   :  { %231 = vsyncadd [#allocation3], 4294967040 }
 0x134   :  { %159 = vsyncpa [#allocation3], 1 }

</bundles_post_ra>
